<compile_context>
chip_gen: v7x
topology: tpu7x:2x2x1
jax: 0.10.0
libtpu: 0.0.40
codegen_flags: <defaults>
</compile_context>

<pallas_src>
from functools import partial

import jax
import jax.numpy as jnp
from jax.experimental import pallas as pl
from jax.experimental.pallas import tpu as pltpu

_LANE = 128
_SUBLANE = 8


def _round_up(x, m):
    return ((x + m - 1) // m) * m


def _cdiv(a, b):
    return -(-a // b)


def _choose_batch_tiling(B):
    """Pick (tile_rows, padded_batch, num_tiles): tiles capped at 256 rows, >=2 tiles when
    the batch is big enough (v7x megacore), last tile mostly full, rows multiple of 8."""
    TB_CAP = 256
    n_tiles = max(1, _cdiv(B, TB_CAP))
    if n_tiles < 2 and B >= 2 * _SUBLANE:
        n_tiles = 2  # give v7x's second TensorCore something to do
    tb = _round_up(_cdiv(B, n_tiles), _SUBLANE)
    b_pad = n_tiles * tb
    return tb, b_pad, n_tiles


def prepare_params(w1, b1, w2, b2):
    """One-time padding + bf16 cast of the weights (call once, reuse across forward calls).

    w1: [in_dim, hidden], b1: [hidden] or [1, hidden]
    w2: [hidden, out_dim], b2: [out_dim] or [1, out_dim]
    Returns (w1p, b1p, w2p, b2p, out_dim) with hidden/out_dim zero-padded to multiples of 128.
    Zero padding is semantically inert: padded hidden cols give ReLU(0+0)=0, padded W2 rows are 0,
    padded output cols are sliced off in mlp_forward.
    """
    in_dim, hidden = w1.shape
    out_dim = w2.shape[1]
    h_pad = _round_up(hidden, _LANE)
    n_pad = _round_up(out_dim, _LANE)

    w1p = jnp.pad(w1, ((0, 0), (0, h_pad - hidden))).astype(jnp.bfloat16)
    b1p = jnp.pad(b1.reshape(1, hidden), ((0, 0), (0, h_pad - hidden))).astype(jnp.float32)
    w2p = jnp.pad(w2, ((0, h_pad - hidden), (0, n_pad - out_dim))).astype(jnp.bfloat16)
    b2p = jnp.pad(b2.reshape(1, out_dim), ((0, 0), (0, n_pad - out_dim))).astype(jnp.float32)
    return w1p, b1p, w2p, b2p, out_dim


def _mlp_kernel(x_ref, w1_ref, b1_ref, w2_ref, b2_ref, o_ref):
    # Cast the streamed f32 x-tile to bf16 in-kernel (free VPU work hidden under DMA).
    x = x_ref[...].astype(jnp.bfloat16)
    # h = relu(x @ W1 + b1): bf16 MXU matmul, f32 accumulate, epilogue in f32.
    h = jnp.dot(x, w1_ref[...], preferred_element_type=jnp.float32)
    h = jnp.maximum(h + b1_ref[...], 0.0)
    # out = h @ W2 + b2: bf16 activations into the MXU, f32 accumulate, bias add in f32.
    out = jnp.dot(h.astype(jnp.bfloat16), w2_ref[...], preferred_element_type=jnp.float32)
    o_ref[...] = (out + b2_ref[...]).astype(o_ref.dtype)


@partial(jax.jit, static_argnames=("out_dim",))
def mlp_forward(x, w1p, b1p, w2p, b2p, *, out_dim):
    """Fused forward pass: relu(x @ W1 + b1) @ W2 + b2, using pre-padded bf16 weights.

    x:   [B, in_dim] float32 (unpadded)
    w1p: [in_dim, h_pad] bf16, b1p: [1, h_pad] f32
    w2p: [h_pad, n_pad] bf16,  b2p: [1, n_pad] f32
    returns [B, out_dim] float32
    """
    B, in_dim = x.shape
    h_pad = w1p.shape[1]
    n_pad = w2p.shape[1]

    tb, b_pad, n_tiles = _choose_batch_tiling(B)
    if b_pad != B:
        # Only pad when B doesn't already fill the tiles; padded rows are discarded below.
        x = jnp.pad(x, ((0, b_pad - B), (0, 0)))

    cost = pl.CostEstimate(
        flops=2 * b_pad * (in_dim * h_pad + h_pad * n_pad),
        transcendentals=0,
        bytes_accessed=(b_pad * in_dim * 4          # x (f32, streamed)
                        + in_dim * h_pad * 2        # W1 (bf16, resident)
                        + h_pad * 4                 # b1
                        + h_pad * n_pad * 2         # W2 (bf16, resident)
                        + n_pad * 4                 # b2
                        + b_pad * n_pad * 4),       # output (f32)
    )

    out_padded = pl.pallas_call(
        _mlp_kernel,
        out_shape=jax.ShapeDtypeStruct((b_pad, n_pad), jnp.float32),
        grid_spec=pltpu.PrefetchScalarGridSpec(
            num_scalar_prefetch=0,
            grid=(n_tiles,),
            in_specs=[
                # x batch tiles stream (double-buffered); last dim = full in_dim (legal, no pad).
                pl.BlockSpec((tb, in_dim), lambda i: (i, 0)),
                # Weights / biases: constant index_map -> VMEM-resident across the whole grid.
                pl.BlockSpec((in_dim, h_pad), lambda i: (0, 0)),
                pl.BlockSpec((1, h_pad), lambda i: (0, 0)),
                pl.BlockSpec((h_pad, n_pad), lambda i: (0, 0)),
                pl.BlockSpec((1, n_pad), lambda i: (0, 0)),
            ],
            # Lane-dense output tile (n_pad is a multiple of 128) -> unmasked stores.
            out_specs=pl.BlockSpec((tb, n_pad), lambda i: (i, 0)),
        ),
        compiler_params=pltpu.CompilerParams(
            dimension_semantics=("parallel",),      # batch tiles shard across TCs on v7x
            vmem_limit_bytes=32 * 1024 * 1024,      # explicit guardrail (v7x: 64 MiB physical)
        ),
        cost_estimate=cost,
    )(x, w1p, b1p, w2p, b2p)

    # For very large B a consumer could keep working on the padded array; kept here for parity
    # with the PyTorch module's output shape.
    return out_padded[:B, :out_dim]


def init_params(key, in_dim, hidden, out_dim):
    """Deterministic init mimicking torch.nn.Linear default (U[-1/sqrt(fan_in), 1/sqrt(fan_in)])."""
    k1, k2, k3, k4 = jax.random.split(key, 4)
    bound1 = 1.0 / jnp.sqrt(jnp.float32(in_dim))
    bound2 = 1.0 / jnp.sqrt(jnp.float32(hidden))
    # Stored transposed vs PyTorch ([out, in] -> [in, out]) so activations stay lane-major.
    w1 = jax.random.uniform(k1, (in_dim, hidden), jnp.float32, -bound1, bound1)
    b1 = jax.random.uniform(k2, (1, hidden), jnp.float32, -bound1, bound1)
    w2 = jax.random.uniform(k3, (hidden, out_dim), jnp.float32, -bound2, bound2)
    b2 = jax.random.uniform(k4, (1, out_dim), jnp.float32, -bound2, bound2)
    return w1, b1, w2, b2


def reference_forward(x, w1, b1, w2, b2):
    h = jnp.maximum(x @ w1 + b1, 0.0)
    return h @ w2 + b2


# TODO(synk): evaluate()/train_model() are host-side DataLoader loops (optimizer, cross-entropy,
# backward pass) and are out of scope for this forward-pass kernel.

if __name__ == "__main__":
    # Small shapes consistent with the module: batch=8, in_dim=64, hidden=32, out_dim=10.
    B, in_dim, hidden, out_dim = 8, 64, 32, 10

    key = jax.random.PRNGKey(0)
    kx, kp = jax.random.split(key)
    x = jax.random.normal(kx, (B, in_dim), jnp.float32)
    w1, b1, w2, b2 = init_params(kp, in_dim, hidden, out_dim)

    # One-time weight preparation (pad to lane-dense tiles + bf16 cast), reused across calls.
    w1p, b1p, w2p, b2p, n_out = prepare_params(w1, b1, w2, b2)

    out = mlp_forward(x, w1p, b1p, w2p, b2p, out_dim=n_out)
    out = jax.block_until_ready(out)

    ref = reference_forward(x, w1, b1, w2, b2)
    assert out.shape == (B, out_dim)
    # bf16 matmul inputs with f32 accumulation -> loose tolerance vs the pure-f32 reference.
    assert jnp.allclose(out, ref, atol=3e-2, rtol=3e-2), "Pallas kernel mismatch vs reference"

    print("KERNEL_OK")
</pallas_src>

<mosaic_0001>
module attributes {stable_mosaic.version = 11 : i64} {
  func.func @_mlp_kernel(%arg0: i32, %arg1: memref<8x64xf32, #tpu.memory_space<vmem>>, %arg2: memref<64x128xbf16, #tpu.memory_space<vmem>>, %arg3: memref<1x128xf32, #tpu.memory_space<vmem>>, %arg4: memref<128x128xbf16, #tpu.memory_space<vmem>>, %arg5: memref<1x128xf32, #tpu.memory_space<vmem>>, %arg6: memref<8x128xf32, #tpu.memory_space<vmem>>) attributes {dimension_semantics = [#tpu.dimension_semantics<parallel>], iteration_bounds = array<i64: 1>, scalar_prefetch = 0 : i64, scratch_operands = 0 : i64, tpu.core_type = #tpu.core_type<tc>, window_params = [{transform_indices = @transform_0, window_bounds = array<i64: 8, 64>}, {pipeline_mode = #tpu.pipeline_mode<synchronous>, transform_indices = @transform_1, window_bounds = array<i64: 64, 128>}, {pipeline_mode = #tpu.pipeline_mode<synchronous>, transform_indices = @transform_2, window_bounds = array<i64: 1, 128>}, {pipeline_mode = #tpu.pipeline_mode<synchronous>, transform_indices = @transform_3, window_bounds = array<i64: 128, 128>}, {pipeline_mode = #tpu.pipeline_mode<synchronous>, transform_indices = @transform_4, window_bounds = array<i64: 1, 128>}, {transform_indices = @transform_5, window_bounds = array<i64: 8, 128>}]} {
    %c0 = arith.constant 0 : index
    %c0_0 = arith.constant 0 : index
    %0 = vector.load %arg1[%c0, %c0_0] : memref<8x64xf32, #tpu.memory_space<vmem>>, vector<8x64xf32>
    %1 = arith.truncf %0 : vector<8x64xf32> to vector<8x64xbf16>
    %c0_1 = arith.constant 0 : index
    %c0_2 = arith.constant 0 : index
    %2 = vector.load %arg2[%c0_1, %c0_2] : memref<64x128xbf16, #tpu.memory_space<vmem>>, vector<64x128xbf16>
    %cst = arith.constant dense<0.000000e+00> : vector<8x128xf32>
    %3 = tpu.matmul %1, %2, %cst {dimension_numbers = #tpu.dot_dimension_numbers<[1], [0], [0], [1], [0, 0, 1, 1], [], []>} : vector<8x64xbf16>, vector<64x128xbf16>, vector<8x128xf32> -> vector<8x128xf32>
    %c0_3 = arith.constant 0 : index
    %c0_4 = arith.constant 0 : index
    %4 = vector.load %arg3[%c0_3, %c0_4] : memref<1x128xf32, #tpu.memory_space<vmem>>, vector<1x128xf32>
    %5 = vector.broadcast %4 : vector<1x128xf32> to vector<8x128xf32>
    %6 = arith.addf %3, %5 : vector<8x128xf32>
    %cst_5 = arith.constant 0.000000e+00 : f32
    %7 = vector.broadcast %cst_5 : f32 to vector<8x128xf32>
    %8 = arith.maximumf %6, %7 : vector<8x128xf32>
    %9 = arith.truncf %8 : vector<8x128xf32> to vector<8x128xbf16>
    %c0_6 = arith.constant 0 : index
    %c0_7 = arith.constant 0 : index
    %10 = vector.load %arg4[%c0_6, %c0_7] : memref<128x128xbf16, #tpu.memory_space<vmem>>, vector<128x128xbf16>
    %cst_8 = arith.constant dense<0.000000e+00> : vector<8x128xf32>
    %11 = tpu.matmul %9, %10, %cst_8 {dimension_numbers = #tpu.dot_dimension_numbers<[1], [0], [0], [1], [0, 0, 1, 1], [], []>} : vector<8x128xbf16>, vector<128x128xbf16>, vector<8x128xf32> -> vector<8x128xf32>
    %c0_9 = arith.constant 0 : index
    %c0_10 = arith.constant 0 : index
    %12 = vector.load %arg5[%c0_9, %c0_10] : memref<1x128xf32, #tpu.memory_space<vmem>>, vector<1x128xf32>
    %13 = vector.broadcast %12 : vector<1x128xf32> to vector<8x128xf32>
    %14 = arith.addf %11, %13 : vector<8x128xf32>
    %c0_11 = arith.constant 0 : index
    %c0_12 = arith.constant 0 : index
    %15 = vector.load %arg6[%c0_11, %c0_12] : memref<8x128xf32, #tpu.memory_space<vmem>>, vector<8x128xf32>
    tpu.vector_store %arg6[%c0_11, %c0_12], %14 {strides = array<i32>} : memref<8x128xf32, #tpu.memory_space<vmem>>, vector<8x128xf32>,
    return
  }
  func.func @transform_0(%arg0: i32) -> (i32, i32) {
    %c0_i32 = arith.constant 0 : i32
    %c0_i32_0 = arith.constant 0 : i32
    return %arg0, %c0_i32 : i32, i32
  }
  func.func @transform_1(%arg0: i32) -> (i32, i32) {
    %c0_i32 = arith.constant 0 : i32
    %c0_i32_0 = arith.constant 0 : i32
    %c0_i32_1 = arith.constant 0 : i32
    return %c0_i32, %c0_i32_0 : i32, i32
  }
  func.func @transform_2(%arg0: i32) -> (i32, i32) {
    %c0_i32 = arith.constant 0 : i32
    %c0_i32_0 = arith.constant 0 : i32
    %c0_i32_1 = arith.constant 0 : i32
    return %c0_i32, %c0_i32_0 : i32, i32
  }
  func.func @transform_3(%arg0: i32) -> (i32, i32) {
    %c0_i32 = arith.constant 0 : i32
    %c0_i32_0 = arith.constant 0 : i32
    %c0_i32_1 = arith.constant 0 : i32
    return %c0_i32, %c0_i32_0 : i32, i32
  }
  func.func @transform_4(%arg0: i32) -> (i32, i32) {
    %c0_i32 = arith.constant 0 : i32
    %c0_i32_0 = arith.constant 0 : i32
    %c0_i32_1 = arith.constant 0 : i32
    return %c0_i32, %c0_i32_0 : i32, i32
  }
  func.func @transform_5(%arg0: i32) -> (i32, i32) {
    %c0_i32 = arith.constant 0 : i32
    %c0_i32_0 = arith.constant 0 : i32
    return %arg0, %c0_i32 : i32, i32
  }
}

</mosaic_0001>

<bundles_post_ra>
// kernel: mlp_forward.1
= control target key start
LH: loop header
LB: loop body
LE: loop exit
PB: predicated region body
PF: predicated region fallthrough
CT: control target
= control target key end

     0   :  { %10 = vsyncpa [#allocation3], 0  ;;  %s549_s0 = inlined_call_operand.hbm [shape: f32[8,64], index: 0, kind: input, shape index: {}]   ;;  %s550_s1 = inlined_call_operand.hbm [shape: bf16[64,128], index: 1, kind: input, shape index: {}]   ;;  %s551_s2 = inlined_call_operand.vmem [shape: f32[1,128], index: 2, kind: input, shape index: {}]   ;;  %s552_s3 = inlined_call_operand.hbm [shape: bf16[128,128], index: 3, kind: input, shape index: {}]   ;;  %s553_s4 = inlined_call_operand.vmem [shape: f32[1,128], index: 4, kind: input, shape index: {}]   ;;  %s554_s5 = inlined_call_operand.hbm [shape: f32[8,128], index: 5, kind: output, shape index: {}]  }
   0x1   :  { %11 = vsyncpa [#allocation6], 0 }
   0x2   :  { %12 = vsyncpa [#allocation4], 0  ;;  %s451_s18 = smov [#allocation5]   ;;  %s357_s22 = scalar_lea.hbm %s550_s1, 512 }
   0x3   :  { %s28_s19 = sshll.u32 %s451_s18, 4  ;;  %p358_p0 = scmp.ne.s32.totalorder %s550_s1, %s357_s22  ;;  %s29_s19 = int_to_ptr.vmem [resolvable:$true] %s28_s19 }
   0x4   :  { %p361_p1 = scmp.lt.u32.totalorder %s357_s22, %s550_s1 }
   0x6   :  { %p363_p2 = pnand %p361_p1, %p358_p0 }
   0x8   :  { %366 = shalt.err (!%p363_p2)
}
   0x9   :  { %s367_s27 = scalar_lea.vmem %s29_s19, 512  ;;  %p372_p4 = scmp.lt.s32.totalorder %s29_s19, %s29_s19 }
   0xa   :  { %p368_p3 = scmp.ne.s32.totalorder %s29_s19, %s367_s27  ;;  %p373_p5 = scmp.lt.s32.totalorder %s367_s27, %s367_s27 }
   0xc   :  { %p374_p6 = por %p373_p5, %p372_p4 }
   0xe   :  { %p375_p7 = pnand %p374_p6, %p368_p3 }
  0x10   :  { %378 = shalt.err (!%p375_p7)
}
  0x11   :  { %s452_s28 = smov 64   ;;  %s453_s29 = smov 4  }
  0x12   :  { %34 = dma.hbm_to_vmem [thread:$0]  %s550_s1, 512, %s29_s19, [#allocation6], %s452_s28, %s452_s28, %s453_s29  }
  0x13   :  { %s454_s7 = smov [#allocation2]   ;;  %s455_s9 = smov [#allocation7]  }
  0x14   :  { %s19_s8 = sshll.u32 %s454_s7, 4  ;;  %s42_s10 = sshll.u32 %s455_s9, 4  ;;  %s20_s8 = int_to_ptr.vmem [resolvable:$true] %s19_s8  ;;  %s43_s10 = int_to_ptr.vmem [resolvable:$true] %s42_s10 }
  0x15   :  { %s379_s13 = scalar_lea.hbm %s549_s0, 128 }
  0x16   :  { %p380_p8 = scmp.ne.s32.totalorder %s549_s0, %s379_s13  ;;  %p383_p9 = scmp.lt.u32.totalorder %s379_s13, %s549_s0 }
  0x18   :  { %p385_p10 = pnand %p383_p9, %p380_p8 }
  0x1a   :  { %388 = shalt.err (!%p385_p10)
}
  0x1b   :  { %s389_s1 = scalar_lea.vmem %s20_s8, 128  ;;  %p394_p12 = scmp.lt.s32.totalorder %s20_s8, %s20_s8 }
  0x1c   :  { %p390_p11 = scmp.ne.s32.totalorder %s20_s8, %s389_s1  ;;  %p395_p13 = scmp.lt.s32.totalorder %s389_s1, %s389_s1 }
  0x1e   :  { %p396_p0 = por %p395_p13, %p394_p12 }
  0x20   :  { %p397_p1 = pnand %p396_p0, %p390_p11 }
  0x22   :  { %400 = shalt.err (!%p397_p1)
}
  0x23   :  { %22 = dma.hbm_to_vmem [thread:$0]  %s549_s0, 128, %s20_s8, [#allocation3]  }
  0x24   :  { %s401_s22 = scalar_lea.hbm %s552_s3, 1024 }
  0x25   :  { %p402_p2 = scmp.ne.s32.totalorder %s552_s3, %s401_s22  ;;  %p405_p3 = scmp.lt.u32.totalorder %s401_s22, %s552_s3 }
  0x27   :  { %p407_p4 = pnand %p405_p3, %p402_p2 }
  0x29   :  { %410 = shalt.err (!%p407_p4)
}
  0x2a   :  { %s411_s27 = scalar_lea.vmem %s43_s10, 1024  ;;  %p416_p6 = scmp.lt.s32.totalorder %s43_s10, %s43_s10 }
  0x2b   :  { %p412_p5 = scmp.ne.s32.totalorder %s43_s10, %s411_s27  ;;  %p417_p7 = scmp.lt.s32.totalorder %s411_s27, %s411_s27 }
  0x2d   :  { %p418_p8 = por %p417_p7, %p416_p6 }
  0x2f   :  { %p419_p9 = pnand %p418_p8, %p412_p5 }
  0x31   :  { %422 = shalt.err (!%p419_p9)
}
  0x32   :  { %48 = dma.hbm_to_vmem [thread:$0]  %s552_s3, 1024, %s43_s10, [#allocation6], %s452_s28, %s452_s28, %s453_s29  }
  0x33   :  { %445 = dma.done.wait [#allocation3], 128  }
  0x34   :  { %446 = vsyncadd [#allocation3], 4294967168 }
  0x35   :  { %447 = dma.done.wait [#allocation6], 1536  }
  0x36   :  { %448 = vsyncadd [#allocation6], 4294965760  ;;  %v456_v0 = vmov 0.0   ;;  %vm457_vm0 = vmmov 0   ;;  %v345_v1 = vld [vmem:[#allocation5] sm:$0xff]   ;;  %v346_v2 = vld [vmem:[#allocation5 + $0x8] sm:$0xff]  }
  0x37   :  { %305 = vmatprep.subr.bf16.mxu0 %v456_v0  ;;  %313 = vmatprep.mubr.msk.bf16.mxu0 %vm457_vm0, %v456_v0  ;;  %v349_v3 = vld [vmem:[#allocation7] sm:$0xff]   ;;  %v347_v4 = vld [vmem:[#allocation5 + $0x10] sm:$0xff]   ;;  %v350_v5 = vld [vmem:[#allocation7 + $0x8] sm:$0xff]   ;;  %vm102_vm1 = vcmask 523264   ;;  %s458_s7 = smov [#allocation8]  }
  0x38   :  { %317 = vmatprep.subr.bf16.mxu1 %v456_v0  ;;  %333 = vmatprep.mubr.msk.bf16.mxu1 %vm457_vm0, %v456_v0  ;;  %v348_v6 = vld [vmem:[#allocation5 + $0x18] sm:$0xff]   ;;  %v351_v8 = vld [vmem:[#allocation7 + $0x10] sm:$0xff]   ;;  %v353_v11 = vld [vmem:[#allocation7 + $0x20] sm:$0xff]   ;;  %s266_s8 = sshll.u32 %s458_s7, 4  ;;  %s267_s8 = int_to_ptr.vmem [resolvable:$true] %s266_s8 }
  0x39   :  { %306 = vmatpush3.bf16.msra.mxu0 %v345_v1  ;;  %318 = vmatpush3.bf16.msra.mxu1 %v349_v3  ;;  %v61_v7 = vld [vmem:[#allocation2] sm:$0xff]  ;;  %v354_v12 = vld [vmem:[#allocation7 + $0x28] sm:$0xff]   ;;  %v355_v13 = vld [vmem:[#allocation7 + $0x30] sm:$0xff]   ;;  %p428_p11 = scmp.lt.s32.totalorder %s267_s8, %s267_s8 }
  0x3a   :  { %307 = vmatprep.subr.bf16.mxu0 %v456_v0  ;;  %319 = vmatprep.subr.bf16.mxu1 %v456_v0  ;;  %v62_v9 = vpack.c.bf16 %v61_v7, %v61_v7  ;;  %v352_v10 = vld [vmem:[#allocation7 + $0x18] sm:$0xff]  }
  0x3b   :  { %v356_v14 = vld [vmem:[#allocation7 + $0x38] sm:$0xff]  }
  0x3c   :  { %v276_v15 = vld [vmem:[%s551_s2] ss:$0 sm:$0xff]  ;;  %s423_s2 = scalar_lea.vmem %s267_s8, 128 }
  0x3d   :  { %308 = vmatpush3.bf16.msra.mxu0 %v346_v2  ;;  %320 = vmatpush3.bf16.msra.mxu1 %v350_v5  ;;  %v282_v23 = vld [vmem:[%s553_s4] ss:$0 sm:$0xff]  ;;  %p424_p10 = scmp.ne.s32.totalorder %s267_s8, %s423_s2  ;;  %p429_p12 = scmp.lt.s32.totalorder %s423_s2, %s423_s2 }
  0x3e   :  { %309 = vmatprep.subr.bf16.mxu0 %v456_v0  ;;  %321 = vmatprep.subr.bf16.mxu1 %v456_v0 }
  0x3f   :  { %p430_p13 = por %p429_p12, %p428_p11 }
  0x41   :  { %310 = vmatpush3.bf16.msra.mxu0 %v347_v4  ;;  %322 = vmatpush3.bf16.msra.mxu1 %v351_v8  ;;  %p431_p0 = pnand %p430_p13, %p424_p10 }
  0x42   :  { %311 = vmatprep.subr.bf16.mxu0 %v456_v0  ;;  %323 = vmatprep.subr.bf16.mxu1 %v456_v0 }
  0x45   :  { %312 = vmatpush3.bf16.msra.mxu0 %v348_v6  ;;  %324 = vmatpush3.bf16.msra.mxu1 %v352_v10 }
  0x46   :  { %325 = vmatprep.subr.bf16.mxu1 %v456_v0 }
  0x48   :  { %314 = vmatmul.mubr.msk.bf16.vlgmr.msra.gmra.mrb[0].mxu0 %vm102_vm1, %v62_v9 }
  0x49   :  { %326 = vmatpush3.bf16.msra.mxu1 %v353_v11 }
  0x4a   :  { %327 = vmatprep.subr.bf16.mxu1 %v456_v0 }
  0x4d   :  { %328 = vmatpush3.bf16.msra.mxu1 %v354_v12 }
  0x4e   :  { %329 = vmatprep.subr.bf16.mxu1 %v456_v0 }
  0x51   :  { %330 = vmatpush3.bf16.msra.mxu1 %v355_v13 }
  0x52   :  { %331 = vmatprep.subr.bf16.mxu1 %v456_v0 }
  0x55   :  { %332 = vmatpush3.bf16.msra.mxu1 %v356_v14 }
 0x11b   :  { %v140_v16 = vpop.f32.mrb[0].mxu0 }
 0x11c   :  { %v141_v17 = vadd.f32 %v276_v15, %v140_v16  ;;  %v315_v18 = vpop.f32.mrb[1].mxu0 }
 0x11d   :  { %v143_v19 = vpop.f32.mrb[2].mxu0 }
 0x11e   :  { %v146_v20 = vmax.f32 %v141_v17, 0.0  ;;  %v316_v21 = vpop.f32.mrb[3].mxu0 }
 0x120   :  { %v147_v22 = vpack.c.bf16 %v146_v20, %v146_v20 }
 0x122   :  { %334 = vmatmul.mubr.bf16.vlgmr.msra.gmra.mrb[0].mxu1 %v147_v22 }
 0x1f5   :  { %v253_v24 = vpop.f32.mrb[0].mxu1 }
 0x1f6   :  { %v254_v25 = vadd.f32 %v282_v23, %v253_v24  ;;  %v335_v26 = vpop.f32.mrb[1].mxu1 }
 0x1f7   :  { %v256_v27 = vpop.f32.mrb[2].mxu1 }
 0x1f8   :  { %259 = vst [vmem:[#allocation8] sm:$0xff] %v254_v25  ;;  %v336_v28 = vpop.f32.mrb[3].mxu1 }
 0x1f9   :  { %434 = shalt.err (!%p431_p0)
}
 0x1fa   :  { %s435_s4 = scalar_lea.hbm %s554_s5, 128 }
 0x1fb   :  { %p436_p1 = scmp.ne.s32.totalorder %s554_s5, %s435_s4  ;;  %p439_p2 = scmp.lt.u32.totalorder %s435_s4, %s554_s5 }
 0x1fd   :  { %p441_p3 = pnand %p439_p2, %p436_p1 }
 0x1ff   :  { %444 = shalt.err (!%p441_p3)
}
 0x200   :  { %269 = dma.vmem_to_hbm [thread:$0]  %s267_s8, 128, %s554_s5, [#allocation4]  }
 0x201   :  { %449 = dma.done.wait [#allocation4], 128  }
 0x202   :  { %450 = vsyncadd [#allocation4], 4294967168 }
 0x203   :  { %273 = vsyncpa [#allocation3], 1 }
 0x204   :  { %274 = vsyncpa [#allocation6], 1 }
 0x205   :  { %275 = vsyncpa [#allocation4], 1 }

</bundles_post_ra>
